<compile_context>
chip_gen: v7x
topology: tpu7x:2x2x1
jax: 0.10.0
libtpu: 0.0.40
codegen_flags: <defaults>
</compile_context>

<pallas_src>
import functools
import math

import jax
import jax.numpy as jnp
from jax.experimental import pallas as pl
from jax.experimental.pallas import tpu as pltpu


def _cdiv(a, b):
    return -(-a // b)


def _round_up(a, b):
    return _cdiv(a, b) * b


def _vmem_limit_bytes():
    """Scoped-VMEM limit to request: ~75% of physical, capped at 100 MiB."""
    try:
        cap = pltpu.get_tpu_info().vmem_capacity_bytes
    except Exception:
        cap = 128 * 1024 * 1024
    return int(min(100 * 1024 * 1024, cap * 3 // 4))


def _num_tensorcores():
    """Best-effort TensorCore count (2 on v7x megacore, 1 on v5e/v6e)."""
    try:
        info = pltpu.get_tpu_info()
        for attr in ("num_cores", "core_count", "num_tensorcores",
                     "tensorcores_per_chip"):
            v = getattr(info, attr, None)
            if isinstance(v, int) and v > 0:
                return v
    except Exception:
        pass
    try:
        v = getattr(jax.devices()[0], "num_cores", None)
        if isinstance(v, int) and v > 0:
            return v
    except Exception:
        pass
    return 1


# ---------------------------------------------------------------------------
# Kernels
# ---------------------------------------------------------------------------

def _lowrank_fused_kernel(x_ref, w_ref, bias_ref, o_ref, *, tn):
    # Single MXU matmul on pre-fused W = A @ B (degenerate low-rank case).
    j = pl.program_id(1)
    col = pl.multiple_of(j * tn, 128)
    x = x_ref[...].astype(w_ref.dtype)          # in-kernel cast, hidden under MXU
    acc = jnp.dot(x, w_ref[...], preferred_element_type=jnp.float32)
    o_ref[...] = (acc + bias_ref[:, pl.ds(col, tn)]).astype(o_ref.dtype)


def _lowrank_kernel(x_ref, a_ref, b_ref, bias_ref, o_ref, xa_ref, *,
                    tn, b_resident):
    # xa = x @ A computed once per M tile (j == 0), stored in compute dtype and
    # reused for every N tile -> x HBM traffic stays at exactly 1x.
    j = pl.program_id(1)

    @pl.when(j == 0)
    def _():
        x = x_ref[...].astype(a_ref.dtype)      # in-kernel cast of x
        xa_ref[...] = jnp.dot(
            x, a_ref[...], preferred_element_type=jnp.float32
        ).astype(xa_ref.dtype)

    col = pl.multiple_of(j * tn, 128)
    b_tile = b_ref[:, pl.ds(col, tn)] if b_resident else b_ref[...]
    acc = jnp.dot(xa_ref[...], b_tile, preferred_element_type=jnp.float32)
    o_ref[...] = (acc + bias_ref[:, pl.ds(col, tn)]).astype(o_ref.dtype)


# ---------------------------------------------------------------------------
# Wrapper
# ---------------------------------------------------------------------------

def lowrank_forward(x, A, B, b=None, *, compute_dtype=jnp.bfloat16,
                    out_dtype=None, tm=None):
    """x: (..., in_features) -> (..., out_features) computing x @ A @ B + b."""
    orig_shape = x.shape
    in_features = int(orig_shape[-1])
    rank, out_features = int(B.shape[0]), int(B.shape[1])
    assert A.shape == (in_features, rank)
    if out_dtype is None:
        out_dtype = x.dtype

    M = 1
    for d in orig_shape[:-1]:
        M *= int(d)
    M = max(M, 1)

    xdb = jnp.dtype(x.dtype).itemsize
    cdb = jnp.dtype(compute_dtype).itemsize
    odb = jnp.dtype(out_dtype).itemsize

    rank_p = _round_up(rank, 128)

    # Lane-dense output width / N tile: keep the MXU >= 256 wide when the output
    # is large; pad out_p up to a multiple of tn (cdiv) instead of forcing tn to
    # divide the 128-padded width.
    out_p0 = _round_up(out_features, 128)
    if out_p0 <= 512:
        tn, out_p = out_p0, out_p0
    else:
        pad512 = _round_up(out_p0, 512) - out_p0
        pad256 = _round_up(out_p0, 256) - out_p0
        tn = 512 if pad512 <= pad256 else 256
        out_p = _round_up(out_p0, tn)

    # Fuse W = A @ B only when the low-rank path has no MXU advantage AND the
    # wrapper-side A @ B is negligible vs. the main matmul.
    fuse = (rank_p >= out_p) and (4 * rank <= M)

    num_cores = _num_tensorcores()
    vmem_limit = _vmem_limit_bytes()
    tile_budget = int(vmem_limit * 0.8)

    # ----- small operands (weights / bias); x is untouched --------------------
    x2d = x.reshape(M, in_features)               # view only: no cast, no pad
    bias = b if b is not None else jnp.zeros((out_features,), jnp.float32)
    bias2d = jnp.pad(bias.astype(jnp.float32).reshape(1, out_features),
                     ((0, 0), (0, out_p - out_features)))

    b_resident = False
    if fuse:
        W = A.astype(jnp.float32) @ B.astype(jnp.float32)
        W = jnp.pad(W, ((0, 0), (0, out_p - out_features))).astype(compute_dtype)
    else:
        A_p = jnp.pad(A.astype(jnp.float32),
                      ((0, 0), (0, rank_p - rank))).astype(compute_dtype)
        B_p = jnp.pad(B.astype(jnp.float32),
                      ((0, rank_p - rank), (0, out_p - out_features))
                      ).astype(compute_dtype)
        # B resident in VMEM (read from HBM exactly once) when it is small.
        b_resident = rank_p * out_p * cdb <= 8 * 1024 * 1024

    # ----- VMEM budgeting & M tile --------------------------------------------
    if fuse:
        w_invariant = (out_p == tn)               # single N tile -> W never refetched
        fixed = out_p * 4 + (1 if w_invariant else 2) * in_features * tn * cdb
        per_row = 2 * in_features * xdb + 2 * tn * odb
    else:
        fixed = in_features * rank_p * cdb + out_p * 4          # A + bias, 1 buffer
        fixed += (rank_p * out_p * cdb) if b_resident else (2 * rank_p * tn * cdb)
        per_row = 2 * in_features * xdb + 2 * tn * odb + rank_p * cdb  # + xa scratch

    if tm is None:
        avail = max(tile_budget - fixed, per_row * 8)
        tm = max(8, (avail // per_row) // 8 * 8)
        tm = min(tm, 1024)
        if num_cores >= 2 and M > 8:
            # >= 2 grid steps along M so megacore (v7x) can use both TCs.
            tm = min(tm, _round_up(_cdiv(M, 2), 8))
        tm = min(tm, _round_up(M, 8))
        tm = max(tm, 8)
    tm = int(tm)
    assert tm % 8 == 0, "row tile must be a multiple of 8"

    grid = (_cdiv(M, tm), out_p // tn)

    # ----- cost estimate -------------------------------------------------------
    if fuse:
        flops = 2 * M * in_features * out_p + M * out_p
        bytes_accessed = (M * in_features * xdb + in_features * out_p * cdb
                          + out_p * 4 + M * out_p * odb)
    else:
        flops = 2 * M * in_features * rank_p + 2 * M * rank_p * out_p + M * out_p
        bytes_accessed = (M * in_features * xdb + in_features * rank_p * cdb
                          + rank_p * out_p * cdb + out_p * 4 + M * out_p * odb)
    cost = pl.CostEstimate(flops=int(flops), transcendentals=0,
                           bytes_accessed=int(bytes_accessed))

    # ----- pallas_call (with guarded single-buffering of invariant operands) ---
    def _run(single_buffer):
        def inv(shape, index_map):
            if single_buffer:
                return pl.BlockSpec(shape, index_map,
                                    pipeline_mode=pl.Buffered(1))
            return pl.BlockSpec(shape, index_map)

        if fuse:
            w_spec = (inv((in_features, tn), lambda i, j: (0, j)) if w_invariant
                      else pl.BlockSpec((in_features, tn), lambda i, j: (0, j)))
            return pl.pallas_call(
                functools.partial(_lowrank_fused_kernel, tn=tn),
                out_shape=jax.ShapeDtypeStruct((M, out_p), out_dtype),
                grid_spec=pltpu.PrefetchScalarGridSpec(
                    num_scalar_prefetch=0,
                    grid=grid,
                    in_specs=[
                        pl.BlockSpec((tm, in_features), lambda i, j: (i, 0)),
                        w_spec,
                        inv((1, out_p), lambda i, j: (0, 0)),
                    ],
                    out_specs=pl.BlockSpec((tm, tn), lambda i, j: (i, j)),
                ),
                compiler_params=pltpu.CompilerParams(
                    dimension_semantics=("parallel", "parallel"),
                    vmem_limit_bytes=vmem_limit),
                cost_estimate=cost,
            )(x2d, W, bias2d)
        else:
            if b_resident:
                b_spec = inv((rank_p, out_p), lambda i, j: (0, 0))
            else:
                b_spec = pl.BlockSpec((rank_p, tn), lambda i, j: (0, j))
            return pl.pallas_call(
                functools.partial(_lowrank_kernel, tn=tn, b_resident=b_resident),
                out_shape=jax.ShapeDtypeStruct((M, out_p), out_dtype),
                grid_spec=pltpu.PrefetchScalarGridSpec(
                    num_scalar_prefetch=0,
                    grid=grid,
                    in_specs=[
                        pl.BlockSpec((tm, in_features), lambda i, j: (i, 0)),
                        inv((in_features, rank_p), lambda i, j: (0, 0)),
                        b_spec,
                        inv((1, out_p), lambda i, j: (0, 0)),
                    ],
                    out_specs=pl.BlockSpec((tm, tn), lambda i, j: (i, j)),
                    scratch_shapes=[pltpu.VMEM((tm, rank_p), compute_dtype)],
                ),
                compiler_params=pltpu.CompilerParams(
                    dimension_semantics=("parallel", "arbitrary"),
                    vmem_limit_bytes=vmem_limit),
                cost_estimate=cost,
            )(x2d, A_p, B_p, bias2d)

    try:
        out2d = _run(True)
    except Exception:
        out2d = _run(False)       # fall back to default double-buffering

    out = out2d if out_p == out_features else out2d[:, :out_features]
    return out.reshape(*orig_shape[:-1], out_features)


# ---------------------------------------------------------------------------
# Init mirroring the PyTorch module
# ---------------------------------------------------------------------------

def init_lowrank_params(key, in_features, out_features, rank, dtype=jnp.float32):
    """kaiming_uniform_ (a=0) for A, B; uniform_(0,1) for bias."""
    kA, kB, kb = jax.random.split(key, 3)
    boundA = math.sqrt(2.0) * math.sqrt(3.0 / rank)           # fan_in of (in, rank)
    boundB = math.sqrt(2.0) * math.sqrt(3.0 / out_features)   # fan_in of (rank, out)
    A = jax.random.uniform(kA, (in_features, rank), dtype, -boundA, boundA)
    B = jax.random.uniform(kB, (rank, out_features), dtype, -boundB, boundB)
    b = jax.random.uniform(kb, (out_features,), dtype, 0.0, 1.0)
    return A, B, b


if __name__ == "__main__":
    key = jax.random.PRNGKey(0)
    kx1, kx2, kx3, kp1, kp2 = jax.random.split(key, 5)

    def ref_fwd(x, A, B, b):
        flat = x.reshape(-1, x.shape[-1])
        return (flat @ A @ B + b).reshape(*x.shape[:-1], B.shape[1])

    # Case 1: small module shapes (low-rank two-matmul path).
    in_f, out_f, rank = 32, 32, 8
    A1, B1, b1 = init_lowrank_params(kp1, in_f, out_f, rank)
    x1 = jax.random.normal(kx1, (2, 8, in_f), jnp.float32)
    ref1 = ref_fwd(x1, A1, B1, b1)
    out1 = jax.block_until_ready(
        lowrank_forward(x1, A1, B1, b1, compute_dtype=jnp.float32))
    assert out1.shape == ref1.shape
    assert jnp.allclose(out1, ref1, atol=1e-3, rtol=1e-3), "case1 f32 mismatch"
    out1_bf = jax.block_until_ready(lowrank_forward(x1, A1, B1, b1))
    assert jnp.allclose(out1_bf, ref1, atol=5e-2, rtol=5e-2), "case1 bf16 mismatch"

    # Case 2: wider output (multiple N tiles, resident B, ragged M tail).
    in_f2, out_f2, rank2 = 32, 520, 8
    A2, B2, b2 = init_lowrank_params(kp2, in_f2, out_f2, rank2)
    x2 = jax.random.normal(kx2, (2, 7, in_f2), jnp.float32)
    ref2 = ref_fwd(x2, A2, B2, b2)
    out2 = jax.block_until_ready(
        lowrank_forward(x2, A2, B2, b2, compute_dtype=jnp.float32))
    assert out2.shape == ref2.shape
    assert jnp.allclose(out2, ref2, atol=1e-3, rtol=1e-3), "case2 f32 mismatch"

    # Case 3: larger batch so the degenerate-rank fused (W = A @ B) path runs.
    x3 = jax.random.normal(kx3, (4, 32, in_f), jnp.float32)
    ref3 = ref_fwd(x3, A1, B1, b1)
    out3 = jax.block_until_ready(
        lowrank_forward(x3, A1, B1, b1, compute_dtype=jnp.float32))
    assert out3.shape == ref3.shape
    assert jnp.allclose(out3, ref3, atol=1e-3, rtol=1e-3), "case3 f32 mismatch"

    print("KERNEL_OK")
</pallas_src>

<mosaic_0001>
module attributes {stable_mosaic.version = 11 : i64} {
  func.func @_lowrank_kernel(%arg0: i32, %arg1: i32, %arg2: memref<16x32xf32, #tpu.memory_space<vmem>>, %arg3: memref<32x128xf32, #tpu.memory_space<vmem>>, %arg4: memref<128x128xf32, #tpu.memory_space<vmem>>, %arg5: memref<1x128xf32, #tpu.memory_space<vmem>>, %arg6: memref<16x128xf32, #tpu.memory_space<vmem>>, %arg7: memref<16x128xf32, #tpu.memory_space<vmem>>) attributes {dimension_semantics = [#tpu.dimension_semantics<parallel>, #tpu.dimension_semantics<arbitrary>], iteration_bounds = array<i64: 1, 1>, scalar_prefetch = 0 : i64, scratch_operands = 1 : i64, tpu.core_type = #tpu.core_type<tc>, window_params = [{transform_indices = @transform_0, window_bounds = array<i64: 16, 32>}, {pipeline_mode = #tpu.pipeline_mode<synchronous>, transform_indices = @transform_1, window_bounds = array<i64: 32, 128>}, {pipeline_mode = #tpu.pipeline_mode<synchronous>, transform_indices = @transform_2, window_bounds = array<i64: 128, 128>}, {pipeline_mode = #tpu.pipeline_mode<synchronous>, transform_indices = @transform_3, window_bounds = array<i64: 1, 128>}, {transform_indices = @transform_4, window_bounds = array<i64: 16, 128>}]} {
    %c0_i32 = arith.constant 0 : i32
    %0 = arith.cmpi eq, %arg1, %c0_i32 : i32
    %1 = arith.extui %0 : i1 to i32
    %c0_i32_0 = arith.constant 0 : i32
    %2 = arith.cmpi ne, %1, %c0_i32_0 : i32
    scf.if %2 {
      %c0_6 = arith.constant 0 : index
      %c0_7 = arith.constant 0 : index
      %14 = vector.load %arg2[%c0_6, %c0_7] : memref<16x32xf32, #tpu.memory_space<vmem>>, vector<16x32xf32>
      %c0_8 = arith.constant 0 : index
      %c0_9 = arith.constant 0 : index
      %15 = vector.load %arg3[%c0_8, %c0_9] : memref<32x128xf32, #tpu.memory_space<vmem>>, vector<32x128xf32>
      %cst_10 = arith.constant dense<0.000000e+00> : vector<16x128xf32>
      %16 = tpu.matmul %14, %15, %cst_10 {dimension_numbers = #tpu.dot_dimension_numbers<[1], [0], [0], [1], [0, 0, 1, 1], [], []>} : vector<16x32xf32>, vector<32x128xf32>, vector<16x128xf32> -> vector<16x128xf32>
      %c0_11 = arith.constant 0 : index
      %c0_12 = arith.constant 0 : index
      %17 = vector.load %arg7[%c0_11, %c0_12] : memref<16x128xf32, #tpu.memory_space<vmem>>, vector<16x128xf32>
      tpu.vector_store %arg7[%c0_11, %c0_12], %16 {strides = array<i32>} : memref<16x128xf32, #tpu.memory_space<vmem>>, vector<16x128xf32>,
    } else {
    }
    %c128_i32 = arith.constant 128 : i32
    %3 = arith.muli %arg1, %c128_i32 : i32
    %4 = tpu.assume_multiple %3, 128 : i32
    %c0 = arith.constant 0 : index
    %5 = arith.index_cast %4 : i32 to index
    %6 = vector.load %arg4[%c0, %5] : memref<128x128xf32, #tpu.memory_space<vmem>>, vector<128x128xf32>
    %c0_1 = arith.constant 0 : index
    %c0_2 = arith.constant 0 : index
    %7 = vector.load %arg7[%c0_1, %c0_2] : memref<16x128xf32, #tpu.memory_space<vmem>>, vector<16x128xf32>
    %cst = arith.constant dense<0.000000e+00> : vector<16x128xf32>
    %8 = tpu.matmul %7, %6, %cst {dimension_numbers = #tpu.dot_dimension_numbers<[1], [0], [0], [1], [0, 0, 1, 1], [], []>} : vector<16x128xf32>, vector<128x128xf32>, vector<16x128xf32> -> vector<16x128xf32>
    %c0_3 = arith.constant 0 : index
    %9 = arith.index_cast %4 : i32 to index
    %10 = vector.load %arg5[%c0_3, %9] : memref<1x128xf32, #tpu.memory_space<vmem>>, vector<1x128xf32>
    %11 = vector.broadcast %10 : vector<1x128xf32> to vector<16x128xf32>
    %12 = arith.addf %8, %11 : vector<16x128xf32>
    %c0_4 = arith.constant 0 : index
    %c0_5 = arith.constant 0 : index
    %13 = vector.load %arg6[%c0_4, %c0_5] : memref<16x128xf32, #tpu.memory_space<vmem>>, vector<16x128xf32>
    tpu.vector_store %arg6[%c0_4, %c0_5], %12 {strides = array<i32>} : memref<16x128xf32, #tpu.memory_space<vmem>>, vector<16x128xf32>,
    return
  }
  func.func @transform_0(%arg0: i32, %arg1: i32) -> (i32, i32) {
    %c0_i32 = arith.constant 0 : i32
    %c0_i32_0 = arith.constant 0 : i32
    return %arg0, %c0_i32 : i32, i32
  }
  func.func @transform_1(%arg0: i32, %arg1: i32) -> (i32, i32) {
    %c0_i32 = arith.constant 0 : i32
    %c0_i32_0 = arith.constant 0 : i32
    %c0_i32_1 = arith.constant 0 : i32
    return %c0_i32, %c0_i32_0 : i32, i32
  }
  func.func @transform_2(%arg0: i32, %arg1: i32) -> (i32, i32) {
    %c0_i32 = arith.constant 0 : i32
    %c0_i32_0 = arith.constant 0 : i32
    %c0_i32_1 = arith.constant 0 : i32
    return %c0_i32, %c0_i32_0 : i32, i32
  }
  func.func @transform_3(%arg0: i32, %arg1: i32) -> (i32, i32) {
    %c0_i32 = arith.constant 0 : i32
    %c0_i32_0 = arith.constant 0 : i32
    %c0_i32_1 = arith.constant 0 : i32
    return %c0_i32, %c0_i32_0 : i32, i32
  }
  func.func @transform_4(%arg0: i32, %arg1: i32) -> (i32, i32) {
    %c0_i32 = arith.constant 0 : i32
    return %arg0, %arg1 : i32, i32
  }
}

module attributes {stable_mosaic.version = 11 : i64} {
  func.func @_lowrank_kernel(%arg0: i32, %arg1: i32, %arg2: memref<16x32xf32, #tpu.memory_space<vmem>>, %arg3: memref<32x128xf32, #tpu.memory_space<vmem>>, %arg4: memref<128x128xf32, #tpu.memory_space<vmem>>, %arg5: memref<1x128xf32, #tpu.memory_space<vmem>>, %arg6: memref<16x128xf32, #tpu.memory_space<vmem>>, %arg7: memref<16x128xf32, #tpu.memory_space<vmem>>) attributes {dimension_semantics = [#tpu.dimension_semantics<parallel>, #tpu.dimension_semantics<arbitrary>], iteration_bounds = array<i64: 1, 1>, scalar_prefetch = 0 : i64, scratch_operands = 1 : i64, tpu.core_type = #tpu.core_type<tc>, window_params = [{transform_indices = @transform_0, window_bounds = array<i64: 16, 32>}, {pipeline_mode = #tpu.pipeline_mode<synchronous>, transform_indices = @transform_1, window_bounds = array<i64: 32, 128>}, {pipeline_mode = #tpu.pipeline_mode<synchronous>, transform_indices = @transform_2, window_bounds = array<i64: 128, 128>}, {pipeline_mode = #tpu.pipeline_mode<synchronous>, transform_indices = @transform_3, window_bounds = array<i64: 1, 128>}, {transform_indices = @transform_4, window_bounds = array<i64: 16, 128>}]} {
    %c0_i32 = arith.constant 0 : i32
    %0 = arith.cmpi eq, %arg1, %c0_i32 : i32
    %1 = arith.extui %0 : i1 to i32
    %c0_i32_0 = arith.constant 0 : i32
    %2 = arith.cmpi ne, %1, %c0_i32_0 : i32
    scf.if %2 {
      %c0_6 = arith.constant 0 : index
      %c0_7 = arith.constant 0 : index
      %14 = vector.load %arg2[%c0_6, %c0_7] : memref<16x32xf32, #tpu.memory_space<vmem>>, vector<16x32xf32>
      %c0_8 = arith.constant 0 : index
      %c0_9 = arith.constant 0 : index
      %15 = vector.load %arg3[%c0_8, %c0_9] : memref<32x128xf32, #tpu.memory_space<vmem>>, vector<32x128xf32>
      %cst_10 = arith.constant dense<0.000000e+00> : vector<16x128xf32>
      %16 = tpu.matmul %14, %15, %cst_10 {dimension_numbers = #tpu.dot_dimension_numbers<[1], [0], [0], [1], [0, 0, 1, 1], [], []>} : vector<16x32xf32>, vector<32x128xf32>, vector<16x128xf32> -> vector<16x128xf32>
      %c0_11 = arith.constant 0 : index
      %c0_12 = arith.constant 0 : index
      %17 = vector.load %arg7[%c0_11, %c0_12] : memref<16x128xf32, #tpu.memory_space<vmem>>, vector<16x128xf32>
      tpu.vector_store %arg7[%c0_11, %c0_12], %16 {strides = array<i32>} : memref<16x128xf32, #tpu.memory_space<vmem>>, vector<16x128xf32>,
    } else {
    }
    %c128_i32 = arith.constant 128 : i32
    %3 = arith.muli %arg1, %c128_i32 : i32
    %4 = tpu.assume_multiple %3, 128 : i32
    %c0 = arith.constant 0 : index
    %5 = arith.index_cast %4 : i32 to index
    %6 = vector.load %arg4[%c0, %5] : memref<128x128xf32, #tpu.memory_space<vmem>>, vector<128x128xf32>
    %c0_1 = arith.constant 0 : index
    %c0_2 = arith.constant 0 : index
    %7 = vector.load %arg7[%c0_1, %c0_2] : memref<16x128xf32, #tpu.memory_space<vmem>>, vector<16x128xf32>
    %cst = arith.constant dense<0.000000e+00> : vector<16x128xf32>
    %8 = tpu.matmul %7, %6, %cst {dimension_numbers = #tpu.dot_dimension_numbers<[1], [0], [0], [1], [0, 0, 1, 1], [], []>} : vector<16x128xf32>, vector<128x128xf32>, vector<16x128xf32> -> vector<16x128xf32>
    %c0_3 = arith.constant 0 : index
    %9 = arith.index_cast %4 : i32 to index
    %10 = vector.load %arg5[%c0_3, %9] : memref<1x128xf32, #tpu.memory_space<vmem>>, vector<1x128xf32>
    %11 = vector.broadcast %10 : vector<1x128xf32> to vector<16x128xf32>
    %12 = arith.addf %8, %11 : vector<16x128xf32>
    %c0_4 = arith.constant 0 : index
    %c0_5 = arith.constant 0 : index
    %13 = vector.load %arg6[%c0_4, %c0_5] : memref<16x128xf32, #tpu.memory_space<vmem>>, vector<16x128xf32>
    tpu.vector_store %arg6[%c0_4, %c0_5], %12 {strides = array<i32>} : memref<16x128xf32, #tpu.memory_space<vmem>>, vector<16x128xf32>,
    return
  }
  func.func @transform_0(%arg0: i32, %arg1: i32) -> (i32, i32) {
    %c0_i32 = arith.constant 0 : i32
    %c0_i32_0 = arith.constant 0 : i32
    return %arg0, %c0_i32 : i32, i32
  }
  func.func @transform_1(%arg0: i32, %arg1: i32) -> (i32, i32) {
    %c0_i32 = arith.constant 0 : i32
    %c0_i32_0 = arith.constant 0 : i32
    %c0_i32_1 = arith.constant 0 : i32
    return %c0_i32, %c0_i32_0 : i32, i32
  }
  func.func @transform_2(%arg0: i32, %arg1: i32) -> (i32, i32) {
    %c0_i32 = arith.constant 0 : i32
    %c0_i32_0 = arith.constant 0 : i32
    %c0_i32_1 = arith.constant 0 : i32
    return %c0_i32, %c0_i32_0 : i32, i32
  }
  func.func @transform_3(%arg0: i32, %arg1: i32) -> (i32, i32) {
    %c0_i32 = arith.constant 0 : i32
    %c0_i32_0 = arith.constant 0 : i32
    %c0_i32_1 = arith.constant 0 : i32
    return %c0_i32, %c0_i32_0 : i32, i32
  }
  func.func @transform_4(%arg0: i32, %arg1: i32) -> (i32, i32) {
    %c0_i32 = arith.constant 0 : i32
    return %arg0, %arg1 : i32, i32
  }
}

</mosaic_0001>

<bundles_post_ra>
// kernel: tpu_custom_call.1
= control target key start
LH: loop header
LB: loop body
LE: loop exit
PB: predicated region body
PF: predicated region fallthrough
CT: control target
= control target key end

     0   :  { %9 = vsyncpa [#allocation4], 0  ;;  %s644_s0 = inlined_call_operand.hbm [shape: f32[16,32], index: 0, kind: input, shape index: {}]   ;;  %s645_s1 = inlined_call_operand.hbm [shape: f32[32,128], index: 1, kind: input, shape index: {}]   ;;  %s646_s2 = inlined_call_operand.hbm [shape: f32[128,128], index: 2, kind: input, shape index: {}]   ;;  %s647_s3 = inlined_call_operand.hbm [shape: f32[1,128], index: 3, kind: input, shape index: {}]   ;;  %s648_s4 = inlined_call_operand.hbm [shape: f32[16,128], index: 4, kind: output, shape index: {}]  }
   0x1   :  { %10 = vsyncpa [#allocation7], 0 }
   0x2   :  { %11 = vsyncpa [#allocation10], 0 }
   0x3   :  { %12 = vsyncpa [#allocation5], 0  ;;  %s531_s15 = smov [#allocation6]   ;;  %s532_s17 = smov [#allocation3]  }
   0x4   :  { %s30_s16 = sshll.u32 %s531_s15, 4  ;;  %s18_s18 = sshll.u32 %s532_s17, 4  ;;  %s31_s16 = int_to_ptr.vmem [resolvable:$true] %s30_s16  ;;  %s563_s18 = int_to_ptr.vmem [resolvable:$true] %s18_s18 }
   0x5   :  { %s413_s21 = scalar_lea.hbm %s645_s1, 512 }
   0x6   :  { %p414_p0 = scmp.ne.s32.totalorder %s645_s1, %s413_s21  ;;  %p417_p1 = scmp.lt.u32.totalorder %s413_s21, %s645_s1 }
   0x8   :  { %p419_p2 = pnand %p417_p1, %p414_p0 }
   0xa   :  { %422 = shalt.err (!%p419_p2)
}
   0xb   :  { %s423_s26 = scalar_lea.vmem %s31_s16, 512  ;;  %p428_p4 = scmp.lt.s32.totalorder %s31_s16, %s31_s16 }
   0xc   :  { %p424_p3 = scmp.ne.s32.totalorder %s31_s16, %s423_s26  ;;  %p429_p5 = scmp.lt.s32.totalorder %s423_s26, %s423_s26 }
   0xe   :  { %p430_p6 = por %p429_p5, %p428_p4 }
  0x10   :  { %p431_p7 = pnand %p430_p6, %p424_p3 }
  0x12   :  { %434 = shalt.err (!%p431_p7)
}
  0x13   :  { %s533_s27 = smov 128   ;;  %s534_s28 = smov 8  }
  0x14   :  { %36 = dma.hbm_to_vmem [thread:$0]  %s645_s1, 512, %s31_s16, [#allocation7], %s533_s27, %s533_s27, %s534_s28  }
  0x15   :  { %s435_s7 = scalar_lea.hbm %s644_s0, 256 }
  0x16   :  { %p436_p8 = scmp.ne.s32.totalorder %s644_s0, %s435_s7  ;;  %p439_p9 = scmp.lt.u32.totalorder %s435_s7, %s644_s0 }
  0x18   :  { %p441_p10 = pnand %p439_p9, %p436_p8 }
  0x1a   :  { %444 = shalt.err (!%p441_p10)
}
  0x1b   :  { %s445_s12 = scalar_lea.vmem %s563_s18, 256  ;;  %p450_p12 = scmp.lt.s32.totalorder %s563_s18, %s563_s18 }
  0x1c   :  { %p446_p11 = scmp.ne.s32.totalorder %s563_s18, %s445_s12  ;;  %p451_p13 = scmp.lt.s32.totalorder %s445_s12, %s445_s12 }
  0x1e   :  { %p452_p0 = por %p451_p13, %p450_p12 }
  0x20   :  { %p453_p1 = pnand %p452_p0, %p446_p11 }
  0x22   :  { %456 = shalt.err (!%p453_p1)
}
  0x23   :  { %24 = dma.hbm_to_vmem [thread:$0]  %s644_s0, 256, %s563_s18, [#allocation4], %s533_s27, %s533_s27, %s534_s28  }
  0x24   :  { %s535_s14 = smov [#allocation8]   ;;  %s536_s16 = smov [#allocation9]  }
  0x25   :  { %s42_s15 = sshll.u32 %s535_s14, 4  ;;  %s55_s17 = sshll.u32 %s536_s16, 4  ;;  %s43_s15 = int_to_ptr.vmem [resolvable:$true] %s42_s15  ;;  %s56_s17 = int_to_ptr.vmem [resolvable:$true] %s55_s17 }
  0x26   :  { %s457_s21 = scalar_lea.hbm %s646_s2, 2048 }
  0x27   :  { %p458_p2 = scmp.ne.s32.totalorder %s646_s2, %s457_s21  ;;  %p461_p3 = scmp.lt.u32.totalorder %s457_s21, %s646_s2 }
  0x29   :  { %p463_p4 = pnand %p461_p3, %p458_p2 }
  0x2b   :  { %466 = shalt.err (!%p463_p4)
}
  0x2c   :  { %s467_s0 = scalar_lea.vmem %s43_s15, 2048  ;;  %p472_p6 = scmp.lt.s32.totalorder %s43_s15, %s43_s15 }
  0x2d   :  { %p468_p5 = scmp.ne.s32.totalorder %s43_s15, %s467_s0  ;;  %p473_p7 = scmp.lt.s32.totalorder %s467_s0, %s467_s0 }
  0x2f   :  { %p474_p8 = por %p473_p7, %p472_p6 }
  0x31   :  { %p475_p9 = pnand %p474_p8, %p468_p5 }
  0x33   :  { %478 = shalt.err (!%p475_p9)
}
  0x34   :  { %48 = dma.hbm_to_vmem [thread:$0]  %s646_s2, 2048, %s43_s15, [#allocation7], %s533_s27, %s533_s27, %s534_s28  }
  0x35   :  { %s479_s5 = scalar_lea.hbm %s647_s3, 16 }
  0x36   :  { %p480_p10 = scmp.ne.s32.totalorder %s647_s3, %s479_s5  ;;  %p483_p11 = scmp.lt.u32.totalorder %s479_s5, %s647_s3 }
  0x38   :  { %p485_p12 = pnand %p483_p11, %p480_p10 }
  0x3a   :  { %488 = shalt.err (!%p485_p12)
}
  0x3b   :  { %s489_s10 = scalar_lea.vmem %s56_s17, 16  ;;  %s493_s11 = scalar_lea.vmem %s56_s17, 32 }
  0x3c   :  { %p490_p13 = scmp.ne.s32.totalorder %s56_s17, %s489_s10  ;;  %p494_p0 = scmp.lt.s32.totalorder %s56_s17, %s56_s17 }
  0x3d   :  { %p495_p1 = scmp.lt.s32.totalorder %s493_s11, %s489_s10 }
  0x3f   :  { %p496_p2 = por %p495_p1, %p494_p0 }
  0x41   :  { %p497_p3 = pnand %p496_p2, %p490_p13 }
  0x43   :  { %500 = shalt.err (!%p497_p3)
}
  0x44   :  { %58 = dma.hbm_to_vmem [thread:$0]  %s647_s3, 16, %s56_s17, [#allocation10]  }
  0x45   :  { %523 = dma.done.wait [#allocation4], 256  }
  0x46   :  { %524 = vsyncadd [#allocation4], 4294967040 }
  0x47   :  { %525 = dma.done.wait [#allocation7], 2560  }
  0x48   :  { %526 = vsyncadd [#allocation7], 4294964736 }
  0x49   :  { %527 = dma.done.wait [#allocation10], 16  }
  0x4a   :  { %528 = vsyncadd [#allocation10], 4294967280  ;;  %vm81_vm0 = vcmask 261120   ;;  %v77_v0 = vld [vmem:[#allocation6] sm:$0xff]  ;;  %v78_v1 = vld [vmem:[#allocation6 + $0x8] sm:$0xff]  ;;  %s537_s3 = smov [#allocation11]  }
  0x4b   :  { %v79_v2 = vld [vmem:[#allocation6 + $0x10] sm:$0xff]  ;;  %v366_v3 = vpack.c.bf16 %v78_v1, %v77_v0  ;;  %v80_v4 = vld [vmem:[#allocation6 + $0x18] sm:$0xff]  ;;  %v169_v7 = vld [vmem:[#allocation8] sm:$0xff]  ;;  %s277_s1 = sshll.u32 %s537_s3, 4  ;;  %s278_s1 = int_to_ptr.vmem [resolvable:$true] %s277_s1 }
  0x4c   :  { %v75_v5 = vld [vmem:[#allocation3] sm:$0xff]  ;;  %v370_v6 = vpack.c.bf16 %v80_v4, %v79_v2  ;;  %v170_v8 = vld [vmem:[#allocation8 + $0x8] sm:$0xff]  ;;  %v172_v11 = vld [vmem:[#allocation8 + $0x18] sm:$0xff]  ;;  %s501_s13 = scalar_lea.vmem %s278_s1, 256  ;;  %p506_p5 = scmp.lt.s32.totalorder %s278_s1, %s278_s1 }
  0x4d   :  { %328 = vmatprep.mubr.msk.f32.mxu0 %vm81_vm0, %v75_v5  ;;  %v171_v9 = vld [vmem:[#allocation8 + $0x10] sm:$0xff]  ;;  %367 = vmatprep.subr.bf16.mxu0 %v366_v3  ;;  %v374_v10 = vpack.c.bf16 %v170_v8, %v169_v7  ;;  %v173_v13 = vld [vmem:[#allocation8 + $0x20] sm:$0xff]  ;;  %v174_v14 = vld [vmem:[#allocation8 + $0x28] sm:$0xff]  ;;  %p502_p4 = scmp.ne.s32.totalorder %s278_s1, %s501_s13  ;;  %p507_p6 = scmp.lt.s32.totalorder %s501_s13, %s501_s13 }
  0x4e   :  { %369 = vmatpush3.bf16.msra.mxu0 %v366_v3  ;;  %v378_v12 = vpack.c.bf16 %v172_v11, %v171_v9  ;;  %v382_v15 = vpack.c.bf16 %v174_v14, %v173_v13  ;;  %v76_v16 = vld [vmem:[#allocation3 + $0x8] sm:$0xff]  ;;  %v175_v17 = vld [vmem:[#allocation8 + $0x30] sm:$0xff]  ;;  %v177_v20 = vld [vmem:[#allocation8 + $0x40] sm:$0xff] }
  0x4f   :  { %371 = vmatprep.subr.bf16.mxu0 %v370_v6  ;;  %375 = vmatprep.subr.bf16.mxu1 %v374_v10  ;;  %v176_v18 = vld [vmem:[#allocation8 + $0x38] sm:$0xff]  ;;  %v178_v21 = vld [vmem:[#allocation8 + $0x48] sm:$0xff]  ;;  %v179_v23 = vld [vmem:[#allocation8 + $0x50] sm:$0xff]  ;;  %p508_p7 = por %p507_p6, %p506_p5 }
  0x50   :  { %377 = vmatpush3.bf16.msra.mxu1 %v374_v10  ;;  %v386_v19 = vpack.c.bf16 %v176_v18, %v175_v17  ;;  %v390_v22 = vpack.c.bf16 %v178_v21, %v177_v20  ;;  %v180_v24 = vld [vmem:[#allocation8 + $0x58] sm:$0xff]  ;;  %v181_v26 = vld [vmem:[#allocation8 + $0x60] sm:$0xff]  ;;  %v182_v27 = vld [vmem:[#allocation8 + $0x68] sm:$0xff] }
  0x51   :  { %379 = vmatprep.subr.bf16.mxu1 %v378_v12  ;;  %v394_v25 = vpack.c.bf16 %v180_v24, %v179_v23  ;;  %v398_v28 = vpack.c.bf16 %v182_v27, %v181_v26  ;;  %v183_v29 = vld [vmem:[#allocation8 + $0x70] sm:$0xff]  ;;  %v184_v30 = vld [vmem:[#allocation8 + $0x78] sm:$0xff]  ;;  %v295_v34 = vld [vmem:[#allocation9] ss:$0 sm:$0xff]  ;;  %p509_p8 = pnand %p508_p7, %p502_p4 }
  0x52   :  { %373 = vmatpush3.bf16.msra.mxu0 %v370_v6  ;;  %v402_v31 = vpack.c.bf16 %v184_v30, %v183_v29 }
  0x54   :  { %381 = vmatpush3.bf16.msra.mxu1 %v378_v12 }
  0x55   :  { %329 = vmatmul.mubr.msk.f32.vlgmr.msra.gmra.mrb[0].mxu0 %vm81_vm0, %v76_v16  ;;  %383 = vmatprep.subr.bf16.mxu1 %v382_v15 }
  0x58   :  { %385 = vmatpush3.bf16.msra.mxu1 %v382_v15 }
  0x59   :  { %387 = vmatprep.subr.bf16.mxu1 %v386_v19 }
  0x5c   :  { %389 = vmatpush3.bf16.msra.mxu1 %v386_v19 }
  0x5d   :  { %391 = vmatprep.subr.bf16.mxu1 %v390_v22 }
  0x60   :  { %393 = vmatpush3.bf16.msra.mxu1 %v390_v22 }
  0x61   :  { %395 = vmatprep.subr.bf16.mxu1 %v394_v25 }
  0x64   :  { %397 = vmatpush3.bf16.msra.mxu1 %v394_v25 }
  0x65   :  { %399 = vmatprep.subr.bf16.mxu1 %v398_v28 }
  0x68   :  { %401 = vmatpush3.bf16.msra.mxu1 %v398_v28 }
  0x69   :  { %403 = vmatprep.subr.bf16.mxu1 %v402_v31 }
  0x6c   :  { %405 = vmatpush3.bf16.msra.mxu1 %v402_v31 }
 0x128   :  { %v330_v32 = vpop.f32.mrb[0].mxu0 }
 0x129   :  { %v154_v33 = vpop.f32.mrb[1].mxu0 }
 0x12a   :  { %363 = vmatprep.mubr.f32.mxu1 %v154_v33 }
 0x12b   :  { %364 = vmatmul.mubr.f32.vlgmr.msra.gmra.mrb[0].mxu1 %v330_v32 }
 0x1fe   :  { %v365_v35 = vpop.f32.mrb[0].mxu1 }
 0x1ff   :  { %v267_v36 = vadd.f32 %v365_v35, %v295_v34  ;;  %v261_v37 = vpop.f32.mrb[1].mxu1 }
 0x200   :  { %v262_v38 = vadd.f32 %v295_v34, %v261_v37 }
 0x201   :  { %271 = vst [vmem:[#allocation11 + $0x8] sm:$0xff] %v267_v36 }
 0x202   :  { %270 = vst [vmem:[#allocation11] sm:$0xff] %v262_v38 }
 0x203   :  { %512 = shalt.err (!%p509_p8)
}
 0x204   :  { %s513_s16 = scalar_lea.hbm %s648_s4, 256 }
 0x205   :  { %p514_p9 = scmp.ne.s32.totalorder %s648_s4, %s513_s16  ;;  %p517_p10 = scmp.lt.u32.totalorder %s513_s16, %s648_s4 }
 0x207   :  { %p519_p11 = pnand %p517_p10, %p514_p9 }
 0x209   :  { %522 = shalt.err (!%p519_p11)
}
 0x20a   :  { %283 = dma.vmem_to_hbm [thread:$0]  %s278_s1, 256, %s648_s4, [#allocation5], %s533_s27, %s533_s27, %s534_s28  }
 0x20b   :  { %529 = dma.done.wait [#allocation5], 256  }
 0x20c   :  { %530 = vsyncadd [#allocation5], 4294967040 }
 0x20d   :  { %287 = vsyncpa [#allocation4], 1 }
 0x20e   :  { %288 = vsyncpa [#allocation7], 1 }
 0x20f   :  { %289 = vsyncpa [#allocation10], 1 }
 0x210   :  { %290 = vsyncpa [#allocation5], 1 }

// kernel: tpu_custom_call.1
= control target key start
LH: loop header
LB: loop body
LE: loop exit
PB: predicated region body
PF: predicated region fallthrough
CT: control target
= control target key end

     0   :  { %9 = vsyncpa [#allocation4], 0  ;;  %s644_s0 = inlined_call_operand.hbm [shape: f32[16,32], index: 0, kind: input, shape index: {}]   ;;  %s645_s1 = inlined_call_operand.hbm [shape: f32[32,128], index: 1, kind: input, shape index: {}]   ;;  %s646_s2 = inlined_call_operand.hbm [shape: f32[128,128], index: 2, kind: input, shape index: {}]   ;;  %s647_s3 = inlined_call_operand.hbm [shape: f32[1,128], index: 3, kind: input, shape index: {}]   ;;  %s648_s4 = inlined_call_operand.hbm [shape: f32[16,128], index: 4, kind: output, shape index: {}]  }
   0x1   :  { %10 = vsyncpa [#allocation7], 0 }
   0x2   :  { %11 = vsyncpa [#allocation10], 0 }
   0x3   :  { %12 = vsyncpa [#allocation5], 0  ;;  %s531_s15 = smov [#allocation6]   ;;  %s532_s17 = smov [#allocation3]  }
   0x4   :  { %s30_s16 = sshll.u32 %s531_s15, 4  ;;  %s18_s18 = sshll.u32 %s532_s17, 4  ;;  %s31_s16 = int_to_ptr.vmem [resolvable:$true] %s30_s16  ;;  %s563_s18 = int_to_ptr.vmem [resolvable:$true] %s18_s18 }
   0x5   :  { %s413_s21 = scalar_lea.hbm %s645_s1, 512 }
   0x6   :  { %p414_p0 = scmp.ne.s32.totalorder %s645_s1, %s413_s21  ;;  %p417_p1 = scmp.lt.u32.totalorder %s413_s21, %s645_s1 }
   0x8   :  { %p419_p2 = pnand %p417_p1, %p414_p0 }
   0xa   :  { %422 = shalt.err (!%p419_p2)
}
   0xb   :  { %s423_s26 = scalar_lea.vmem %s31_s16, 512  ;;  %p428_p4 = scmp.lt.s32.totalorder %s31_s16, %s31_s16 }
   0xc   :  { %p424_p3 = scmp.ne.s32.totalorder %s31_s16, %s423_s26  ;;  %p429_p5 = scmp.lt.s32.totalorder %s423_s26, %s423_s26 }
   0xe   :  { %p430_p6 = por %p429_p5, %p428_p4 }
  0x10   :  { %p431_p7 = pnand %p430_p6, %p424_p3 }
  0x12   :  { %434 = shalt.err (!%p431_p7)
}
  0x13   :  { %s533_s27 = smov 128   ;;  %s534_s28 = smov 8  }
  0x14   :  { %36 = dma.hbm_to_vmem [thread:$0]  %s645_s1, 512, %s31_s16, [#allocation7], %s533_s27, %s533_s27, %s534_s28  }
  0x15   :  { %s435_s7 = scalar_lea.hbm %s644_s0, 256 }
  0x16   :  { %p436_p8 = scmp.ne.s32.totalorder %s644_s0, %s435_s7  ;;  %p439_p9 = scmp.lt.u32.totalorder %s435_s7, %s644_s0 }
  0x18   :  { %p441_p10 = pnand %p439_p9, %p436_p8 }
  0x1a   :  { %444 = shalt.err (!%p441_p10)
}
  0x1b   :  { %s445_s12 = scalar_lea.vmem %s563_s18, 256  ;;  %p450_p12 = scmp.lt.s32.totalorder %s563_s18, %s563_s18 }
  0x1c   :  { %p446_p11 = scmp.ne.s32.totalorder %s563_s18, %s445_s12  ;;  %p451_p13 = scmp.lt.s32.totalorder %s445_s12, %s445_s12 }
  0x1e   :  { %p452_p0 = por %p451_p13, %p450_p12 }
  0x20   :  { %p453_p1 = pnand %p452_p0, %p446_p11 }
  0x22   :  { %456 = shalt.err (!%p453_p1)
}
  0x23   :  { %24 = dma.hbm_to_vmem [thread:$0]  %s644_s0, 256, %s563_s18, [#allocation4], %s533_s27, %s533_s27, %s534_s28  }
  0x24   :  { %s535_s14 = smov [#allocation8]   ;;  %s536_s16 = smov [#allocation9]  }
  0x25   :  { %s42_s15 = sshll.u32 %s535_s14, 4  ;;  %s55_s17 = sshll.u32 %s536_s16, 4  ;;  %s43_s15 = int_to_ptr.vmem [resolvable:$true] %s42_s15  ;;  %s56_s17 = int_to_ptr.vmem [resolvable:$true] %s55_s17 }
  0x26   :  { %s457_s21 = scalar_lea.hbm %s646_s2, 2048 }
  0x27   :  { %p458_p2 = scmp.ne.s32.totalorder %s646_s2, %s457_s21  ;;  %p461_p3 = scmp.lt.u32.totalorder %s457_s21, %s646_s2 }
  0x29   :  { %p463_p4 = pnand %p461_p3, %p458_p2 }
  0x2b   :  { %466 = shalt.err (!%p463_p4)
}
  0x2c   :  { %s467_s0 = scalar_lea.vmem %s43_s15, 2048  ;;  %p472_p6 = scmp.lt.s32.totalorder %s43_s15, %s43_s15 }
  0x2d   :  { %p468_p5 = scmp.ne.s32.totalorder %s43_s15, %s467_s0  ;;  %p473_p7 = scmp.lt.s32.totalorder %s467_s0, %s467_s0 }
  0x2f   :  { %p474_p8 = por %p473_p7, %p472_p6 }
  0x31   :  { %p475_p9 = pnand %p474_p8, %p468_p5 }
  0x33   :  { %478 = shalt.err (!%p475_p9)
}
  0x34   :  { %48 = dma.hbm_to_vmem [thread:$0]  %s646_s2, 2048, %s43_s15, [#allocation7], %s533_s27, %s533_s27, %s534_s28  }
  0x35   :  { %s479_s5 = scalar_lea.hbm %s647_s3, 16 }
  0x36   :  { %p480_p10 = scmp.ne.s32.totalorder %s647_s3, %s479_s5  ;;  %p483_p11 = scmp.lt.u32.totalorder %s479_s5, %s647_s3 }
  0x38   :  { %p485_p12 = pnand %p483_p11, %p480_p10 }
  0x3a   :  { %488 = shalt.err (!%p485_p12)
}
  0x3b   :  { %s489_s10 = scalar_lea.vmem %s56_s17, 16  ;;  %s493_s11 = scalar_lea.vmem %s56_s17, 32 }
  0x3c   :  { %p490_p13 = scmp.ne.s32.totalorder %s56_s17, %s489_s10  ;;  %p494_p0 = scmp.lt.s32.totalorder %s56_s17, %s56_s17 }
  0x3d   :  { %p495_p1 = scmp.lt.s32.totalorder %s493_s11, %s489_s10 }
  0x3f   :  { %p496_p2 = por %p495_p1, %p494_p0 }
  0x41   :  { %p497_p3 = pnand %p496_p2, %p490_p13 }
  0x43   :  { %500 = shalt.err (!%p497_p3)
}
  0x44   :  { %58 = dma.hbm_to_vmem [thread:$0]  %s647_s3, 16, %s56_s17, [#allocation10]  }
  0x45   :  { %523 = dma.done.wait [#allocation4], 256  }
  0x46   :  { %524 = vsyncadd [#allocation4], 4294967040 }
  0x47   :  { %525 = dma.done.wait [#allocation7], 2560  }
  0x48   :  { %526 = vsyncadd [#allocation7], 4294964736 }
  0x49   :  { %527 = dma.done.wait [#allocation10], 16  }
  0x4a   :  { %528 = vsyncadd [#allocation10], 4294967280  ;;  %vm81_vm0 = vcmask 261120   ;;  %v77_v0 = vld [vmem:[#allocation6] sm:$0xff]  ;;  %v78_v1 = vld [vmem:[#allocation6 + $0x8] sm:$0xff]  ;;  %s537_s3 = smov [#allocation11]  }
  0x4b   :  { %v79_v2 = vld [vmem:[#allocation6 + $0x10] sm:$0xff]  ;;  %v366_v3 = vpack.c.bf16 %v78_v1, %v77_v0  ;;  %v80_v4 = vld [vmem:[#allocation6 + $0x18] sm:$0xff]  ;;  %v169_v7 = vld [vmem:[#allocation8] sm:$0xff]  ;;  %s277_s1 = sshll.u32 %s537_s3, 4  ;;  %s278_s1 = int_to_ptr.vmem [resolvable:$true] %s277_s1 }
  0x4c   :  { %v75_v5 = vld [vmem:[#allocation3] sm:$0xff]  ;;  %v370_v6 = vpack.c.bf16 %v80_v4, %v79_v2  ;;  %v170_v8 = vld [vmem:[#allocation8 + $0x8] sm:$0xff]  ;;  %v172_v11 = vld [vmem:[#allocation8 + $0x18] sm:$0xff]  ;;  %s501_s13 = scalar_lea.vmem %s278_s1, 256  ;;  %p506_p5 = scmp.lt.s32.totalorder %s278_s1, %s278_s1 }
  0x4d   :  { %328 = vmatprep.mubr.msk.f32.mxu0 %vm81_vm0, %v75_v5  ;;  %v171_v9 = vld [vmem:[#allocation8 + $0x10] sm:$0xff]  ;;  %367 = vmatprep.subr.bf16.mxu0 %v366_v3  ;;  %v374_v10 = vpack.c.bf16 %v170_v8, %v169_v7  ;;  %v173_v13 = vld [vmem:[#allocation8 + $0x20] sm:$0xff]  ;;  %v174_v14 = vld [vmem:[#allocation8 + $0x28] sm:$0xff]  ;;  %p502_p4 = scmp.ne.s32.totalorder %s278_s1, %s501_s13  ;;  %p507_p6 = scmp.lt.s32.totalorder %s501_s13, %s501_s13 }
  0x4e   :  { %369 = vmatpush3.bf16.msra.mxu0 %v366_v3  ;;  %v378_v12 = vpack.c.bf16 %v172_v11, %v171_v9  ;;  %v382_v15 = vpack.c.bf16 %v174_v14, %v173_v13  ;;  %v76_v16 = vld [vmem:[#allocation3 + $0x8] sm:$0xff]  ;;  %v175_v17 = vld [vmem:[#allocation8 + $0x30] sm:$0xff]  ;;  %v177_v20 = vld [vmem:[#allocation8 + $0x40] sm:$0xff] }
  0x4f   :  { %371 = vmatprep.subr.bf16.mxu0 %v370_v6  ;;  %375 = vmatprep.subr.bf16.mxu1 %v374_v10  ;;  %v176_v18 = vld [vmem:[#allocation8 + $0x38] sm:$0xff]  ;;  %v178_v21 = vld [vmem:[#allocation8 + $0x48] sm:$0xff]  ;;  %v179_v23 = vld [vmem:[#allocation8 + $0x50] sm:$0xff]  ;;  %p508_p7 = por %p507_p6, %p506_p5 }
  0x50   :  { %377 = vmatpush3.bf16.msra.mxu1 %v374_v10  ;;  %v386_v19 = vpack.c.bf16 %v176_v18, %v175_v17  ;;  %v390_v22 = vpack.c.bf16 %v178_v21, %v177_v20  ;;  %v180_v24 = vld [vmem:[#allocation8 + $0x58] sm:$0xff]  ;;  %v181_v26 = vld [vmem:[#allocation8 + $0x60] sm:$0xff]  ;;  %v182_v27 = vld [vmem:[#allocation8 + $0x68] sm:$0xff] }
  0x51   :  { %379 = vmatprep.subr.bf16.mxu1 %v378_v12  ;;  %v394_v25 = vpack.c.bf16 %v180_v24, %v179_v23  ;;  %v398_v28 = vpack.c.bf16 %v182_v27, %v181_v26  ;;  %v183_v29 = vld [vmem:[#allocation8 + $0x70] sm:$0xff]  ;;  %v184_v30 = vld [vmem:[#allocation8 + $0x78] sm:$0xff]  ;;  %v295_v34 = vld [vmem:[#allocation9] ss:$0 sm:$0xff]  ;;  %p509_p8 = pnand %p508_p7, %p502_p4 }
  0x52   :  { %373 = vmatpush3.bf16.msra.mxu0 %v370_v6  ;;  %v402_v31 = vpack.c.bf16 %v184_v30, %v183_v29 }
  0x54   :  { %381 = vmatpush3.bf16.msra.mxu1 %v378_v12 }
  0x55   :  { %329 = vmatmul.mubr.msk.f32.vlgmr.msra.gmra.mrb[0].mxu0 %vm81_vm0, %v76_v16  ;;  %383 = vmatprep.subr.bf16.mxu1 %v382_v15 }
  0x58   :  { %385 = vmatpush3.bf16.msra.mxu1 %v382_v15 }
  0x59   :  { %387 = vmatprep.subr.bf16.mxu1 %v386_v19 }
  0x5c   :  { %389 = vmatpush3.bf16.msra.mxu1 %v386_v19 }
  0x5d   :  { %391 = vmatprep.subr.bf16.mxu1 %v390_v22 }
  0x60   :  { %393 = vmatpush3.bf16.msra.mxu1 %v390_v22 }
  0x61   :  { %395 = vmatprep.subr.bf16.mxu1 %v394_v25 }
  0x64   :  { %397 = vmatpush3.bf16.msra.mxu1 %v394_v25 }
  0x65   :  { %399 = vmatprep.subr.bf16.mxu1 %v398_v28 }
  0x68   :  { %401 = vmatpush3.bf16.msra.mxu1 %v398_v28 }
  0x69   :  { %403 = vmatprep.subr.bf16.mxu1 %v402_v31 }
  0x6c   :  { %405 = vmatpush3.bf16.msra.mxu1 %v402_v31 }
 0x128   :  { %v330_v32 = vpop.f32.mrb[0].mxu0 }
 0x129   :  { %v154_v33 = vpop.f32.mrb[1].mxu0 }
 0x12a   :  { %363 = vmatprep.mubr.f32.mxu1 %v154_v33 }
 0x12b   :  { %364 = vmatmul.mubr.f32.vlgmr.msra.gmra.mrb[0].mxu1 %v330_v32 }
 0x1fe   :  { %v365_v35 = vpop.f32.mrb[0].mxu1 }
 0x1ff   :  { %v267_v36 = vadd.f32 %v365_v35, %v295_v34  ;;  %v261_v37 = vpop.f32.mrb[1].mxu1 }
 0x200   :  { %v262_v38 = vadd.f32 %v295_v34, %v261_v37 }
 0x201   :  { %271 = vst [vmem:[#allocation11 + $0x8] sm:$0xff] %v267_v36 }
 0x202   :  { %270 = vst [vmem:[#allocation11] sm:$0xff] %v262_v38 }
 0x203   :  { %512 = shalt.err (!%p509_p8)
}
 0x204   :  { %s513_s16 = scalar_lea.hbm %s648_s4, 256 }
 0x205   :  { %p514_p9 = scmp.ne.s32.totalorder %s648_s4, %s513_s16  ;;  %p517_p10 = scmp.lt.u32.totalorder %s513_s16, %s648_s4 }
 0x207   :  { %p519_p11 = pnand %p517_p10, %p514_p9 }
 0x209   :  { %522 = shalt.err (!%p519_p11)
}
 0x20a   :  { %283 = dma.vmem_to_hbm [thread:$0]  %s278_s1, 256, %s648_s4, [#allocation5], %s533_s27, %s533_s27, %s534_s28  }
 0x20b   :  { %529 = dma.done.wait [#allocation5], 256  }
 0x20c   :  { %530 = vsyncadd [#allocation5], 4294967040 }
 0x20d   :  { %287 = vsyncpa [#allocation4], 1 }
 0x20e   :  { %288 = vsyncpa [#allocation7], 1 }
 0x20f   :  { %289 = vsyncpa [#allocation10], 1 }
 0x210   :  { %290 = vsyncpa [#allocation5], 1 }

</bundles_post_ra>
